<compile_context>
chip_gen: v5e
topology: v5e:2x2
jax: 0.10.0
libtpu: 0.0.40
codegen_flags: <defaults>
</compile_context>

<pallas_src>
import math

import jax
import jax.numpy as jnp
from jax.experimental import pallas as pl
from jax.experimental.pallas import tpu as pltpu

# ---------------- configuration --------------------------------------------
DATA_DIM = 16            # data_dim
HIDDEN_DIM = 25          # hidden_dim default of the module
BATCH = 1000             # demo batch (not a multiple of the tile -> exercises padding)
BLOCK_ROWS = 256         # rows per grid step (review: >=256; 512-2048 for production)

H_PAD = 128              # hidden dim padded to one full lane register
OUT_COLS = 8             # narrow output: lanes 0/1 valid (mean, |sigma|), rest zero
B_COLS = 2 * H_PAD + OUT_COLS   # fused weight width: [F | F^2 | folded-linear]

WEIGHT_DTYPE = jnp.float32      # flip to jnp.bfloat16 to halve resident weight DMA


def _round_up(n, m):
    return ((n + m - 1) // m) * m


# ------------------------------ kernel --------------------------------------
def fm_kernel(x_ref, b_ref, wgt_ref, bgp_ref, o_ref):
    """One TM-row tile of the FactorizationMachine forward (2 MXU dots)."""
    x = x_ref[...]                                             # (TM, D) f32
    xx = jnp.concatenate([x, x * x], axis=-1)                  # (TM, 2D)

    b = b_ref[...].astype(jnp.float32)                         # (2D, 264) resident
    r = jnp.dot(xx, b, preferred_element_type=jnp.float32)     # (TM, 264)

    xf = r[:, :H_PAD]                                          # x @ F
    sm_sq = r[:, H_PAD:2 * H_PAD]                              # (x^2) @ (F^2)
    lin_fold = r[:, 2 * H_PAD:]                                # (x @ V) * rowsum(Wg), (TM, 8)

    core = 0.5 * (xf * xf) - sm_sq                             # 0.5*sq_sm - sm_sq

    w = wgt_ref[...].astype(jnp.float32)                       # (128, 8) resident
    y = jnp.dot(core, w, preferred_element_type=jnp.float32) + lin_fold + bgp_ref[...]

    # column 0 = mean, column 1 = |sigma|; epilogue only over the real 8 lanes
    col = jax.lax.broadcasted_iota(jnp.int32, y.shape, 1)
    o_ref[...] = jnp.where(col == 1, jnp.abs(y), y)


# ------------------------------ wrapper --------------------------------------
def fm_forward(params, x, block_rows=BLOCK_ROWS):
    N, D = x.shape
    assert params["b_ext"].shape == (2 * D, B_COLS), "packed weights do not match data_dim"

    tm = min(block_rows, _round_up(N, 8))          # tile rows (multiple of 8)
    n_pad = _round_up(N, tm)
    x_pad = jnp.pad(x, ((0, n_pad - N), (0, 0))) if n_pad != N else x

    out = pl.pallas_call(
        fm_kernel,
        grid=(n_pad // tm,),
        out_shape=jax.ShapeDtypeStruct((n_pad, OUT_COLS), jnp.float32),
        in_specs=[
            pl.BlockSpec((tm, D), lambda i: (i, 0)),               # x tile (streams)
            pl.BlockSpec((2 * D, B_COLS), lambda i: (0, 0)),       # fused B (resident)
            pl.BlockSpec((H_PAD, OUT_COLS), lambda i: (0, 0)),     # Wg^T pad (resident)
            pl.BlockSpec((1, OUT_COLS), lambda i: (0, 0)),         # bg' (resident)
        ],
        out_specs=pl.BlockSpec((tm, OUT_COLS), lambda i: (i, 0)),
        compiler_params=pltpu.CompilerParams(dimension_semantics=("parallel",)),
    )(x_pad, params["b_ext"], params["wgt"], params["bgp"])

    pair = out[:N, :2]                              # single slice of the valid columns
    return pair[:, 0], pair[:, 1]


# ------------------------------ parameter packing ----------------------------
def pack_params(F, V, bias, Wg, bg, weight_dtype=WEIGHT_DTYPE):
    """Precompute device-ready fused / folded weights (done once at init)."""
    D, H = F.shape
    assert H <= H_PAD, f"hidden_dim={H} exceeds H_PAD={H_PAD}"
    assert Wg.shape == (2, H) and V.shape == (D, 1) and bg.shape == (2,)

    s = jnp.sum(Wg, axis=1)                                     # rowsum(Wg), (2,)

    # Block-diagonal fused weight: [ F | 0 | V*s ] over x rows, [ 0 | F^2 | 0 ] over x^2 rows.
    B = jnp.zeros((2 * D, B_COLS), jnp.float32)
    B = B.at[:D, :H].set(F)
    B = B.at[D:, H_PAD:H_PAD + H].set(F * F)                    # F**2 in f32 before any cast
    B = B.at[:D, 2 * H_PAD:2 * H_PAD + 2].set(V * s[None, :])   # folded linear term

    wgt = jnp.zeros((H_PAD, OUT_COLS), jnp.float32).at[:H, :2].set(Wg.T)
    bgp = jnp.zeros((1, OUT_COLS), jnp.float32).at[0, :2].set(bg + bias[0] * s)

    return dict(b_ext=B.astype(weight_dtype), wgt=wgt.astype(weight_dtype), bgp=bgp)


def init_params(key, data_dim=DATA_DIM, hidden_dim=HIDDEN_DIM):
    k_f, k_v, k_wg, k_bg = jax.random.split(key, 4)

    # xavier_uniform_ for F and V (gain=1), zeros bias — as in the module
    bf = math.sqrt(6.0 / (data_dim + hidden_dim))
    F = jax.random.uniform(k_f, (data_dim, hidden_dim), jnp.float32, -bf, bf)
    bv = math.sqrt(6.0 / (data_dim + 1))
    V = jax.random.uniform(k_v, (data_dim, 1), jnp.float32, -bv, bv)
    bias = jnp.zeros((1,), jnp.float32)

    # gaussian_dist = Linear(hidden_dim, 2), default init U(-1/sqrt(H), 1/sqrt(H))
    bl = 1.0 / math.sqrt(hidden_dim)
    Wg = jax.random.uniform(k_wg, (2, hidden_dim), jnp.float32, -bl, bl)
    bg = jax.random.uniform(k_bg, (2,), jnp.float32, -bl, bl)

    params = dict(F=F, V=V, bias=bias, Wg=Wg, bg=bg)
    params.update(pack_params(F, V, bias, Wg, bg))
    return params


# ------------------------------ pure-JAX reference ---------------------------
def fm_reference(params, x):
    sq_sm = jnp.matmul(x, params["F"]) ** 2
    sm_sq = jnp.matmul(x ** 2, params["F"] ** 2)
    lin = jnp.matmul(x, params["V"])
    latent = params["bias"] + lin + 0.5 * sq_sm - sm_sq
    out = latent @ params["Wg"].T + params["bg"]
    return out[:, 0], jnp.abs(out[:, 1])


# ------------------------------ main ------------------------------------------
if __name__ == "__main__":
    # TODO(synk): only the forward pass is implemented; fit() (AdamW training
    # loop, GaussianNLLLoss) is out of scope for a forward kernel.
    root = jax.random.PRNGKey(0)
    k_params, k_x = jax.random.split(root)

    params = init_params(k_params)
    x = jax.random.normal(k_x, (BATCH, DATA_DIM), jnp.float32)

    mu, sigma = fm_forward(params, x)
    mu, sigma = jax.block_until_ready((mu, sigma))

    mu_ref, sigma_ref = fm_reference(params, x)
    assert mu.shape == (BATCH,) and sigma.shape == (BATCH,)
    assert bool(jnp.all(jnp.isfinite(mu))) and bool(jnp.all(jnp.isfinite(sigma)))
    assert bool(jnp.allclose(mu, mu_ref, atol=5e-4, rtol=5e-4))
    assert bool(jnp.allclose(sigma, sigma_ref, atol=5e-4, rtol=5e-4))
    assert bool(jnp.all(sigma >= 0.0))
    print("KERNEL_OK")
</pallas_src>

<mosaic_0001>
module attributes {stable_mosaic.version = 11 : i64} {
  func.func @fm_kernel(%arg0: i32, %arg1: memref<256x16xf32, #tpu.memory_space<vmem>>, %arg2: memref<32x264xf32, #tpu.memory_space<vmem>>, %arg3: memref<128x8xf32, #tpu.memory_space<vmem>>, %arg4: memref<1x8xf32, #tpu.memory_space<vmem>>, %arg5: memref<256x8xf32, #tpu.memory_space<vmem>>) attributes {dimension_semantics = [#tpu.dimension_semantics<parallel>], iteration_bounds = array<i64: 4>, scalar_prefetch = 0 : i64, scratch_operands = 0 : i64, tpu.core_type = #tpu.core_type<tc>, window_params = [{transform_indices = @transform_0, window_bounds = array<i64: 256, 16>}, {pipeline_mode = #tpu.pipeline_mode<synchronous>, transform_indices = @transform_1, window_bounds = array<i64: 32, 264>}, {pipeline_mode = #tpu.pipeline_mode<synchronous>, transform_indices = @transform_2, window_bounds = array<i64: 128, 8>}, {pipeline_mode = #tpu.pipeline_mode<synchronous>, transform_indices = @transform_3, window_bounds = array<i64: 1, 8>}, {transform_indices = @transform_4, window_bounds = array<i64: 256, 8>}]} {
    %c0 = arith.constant 0 : index
    %c0_0 = arith.constant 0 : index
    %0 = vector.load %arg1[%c0, %c0_0] : memref<256x16xf32, #tpu.memory_space<vmem>>, vector<256x16xf32>
    %1 = arith.mulf %0, %0 : vector<256x16xf32>
    %2 = tpu.concatenate %0, %1 in 1 : vector<256x16xf32>, vector<256x16xf32> -> vector<256x32xf32>
    %c0_1 = arith.constant 0 : index
    %c0_2 = arith.constant 0 : index
    %3 = vector.load %arg2[%c0_1, %c0_2] : memref<32x264xf32, #tpu.memory_space<vmem>>, vector<32x264xf32>
    %cst = arith.constant dense<0.000000e+00> : vector<256x264xf32>
    %4 = tpu.matmul %2, %3, %cst {dimension_numbers = #tpu.dot_dimension_numbers<[1], [0], [0], [1], [0, 0, 1, 1], [], []>} : vector<256x32xf32>, vector<32x264xf32>, vector<256x264xf32> -> vector<256x264xf32>
    %5 = vector.extract_strided_slice %4 {offsets = [0, 0], sizes = [256, 128], strides = [1, 1]} : vector<256x264xf32> to vector<256x128xf32>
    %6 = vector.extract_strided_slice %4 {offsets = [0, 128], sizes = [256, 128], strides = [1, 1]} : vector<256x264xf32> to vector<256x128xf32>
    %7 = vector.extract_strided_slice %4 {offsets = [0, 256], sizes = [256, 8], strides = [1, 1]} : vector<256x264xf32> to vector<256x8xf32>
    %8 = arith.mulf %5, %5 : vector<256x128xf32>
    %cst_3 = arith.constant 5.000000e-01 : f32
    %9 = vector.broadcast %cst_3 : f32 to vector<256x128xf32>
    %10 = arith.mulf %9, %8 : vector<256x128xf32>
    %11 = arith.subf %10, %6 : vector<256x128xf32>
    %c0_4 = arith.constant 0 : index
    %c0_5 = arith.constant 0 : index
    %12 = vector.load %arg3[%c0_4, %c0_5] : memref<128x8xf32, #tpu.memory_space<vmem>>, vector<128x8xf32>
    %cst_6 = arith.constant dense<0.000000e+00> : vector<256x8xf32>
    %13 = tpu.matmul %11, %12, %cst_6 {dimension_numbers = #tpu.dot_dimension_numbers<[1], [0], [0], [1], [0, 0, 1, 1], [], []>} : vector<256x128xf32>, vector<128x8xf32>, vector<256x8xf32> -> vector<256x8xf32>
    %14 = arith.addf %13, %7 : vector<256x8xf32>
    %c0_7 = arith.constant 0 : index
    %c0_8 = arith.constant 0 : index
    %15 = vector.load %arg4[%c0_7, %c0_8] : memref<1x8xf32, #tpu.memory_space<vmem>>, vector<1x8xf32>
    %16 = vector.broadcast %15 : vector<1x8xf32> to vector<256x8xf32>
    %17 = arith.addf %14, %16 : vector<256x8xf32>
    %18 = tpu.iota {dimensions = array<i32: 1>} : vector<256x8xi32>
    %c1_i32 = arith.constant 1 : i32
    %19 = vector.broadcast %c1_i32 : i32 to vector<256x8xi32>
    %20 = arith.cmpi eq, %18, %19 : vector<256x8xi32>
    %21 = math.absf %17 : vector<256x8xf32>
    %22 = arith.select %20, %21, %17 : vector<256x8xi1>, vector<256x8xf32>
    %c0_9 = arith.constant 0 : index
    %c0_10 = arith.constant 0 : index
    %23 = vector.load %arg5[%c0_9, %c0_10] : memref<256x8xf32, #tpu.memory_space<vmem>>, vector<256x8xf32>
    tpu.vector_store %arg5[%c0_9, %c0_10], %22 {strides = array<i32>} : memref<256x8xf32, #tpu.memory_space<vmem>>, vector<256x8xf32>,
    return
  }
  func.func @transform_0(%arg0: i32) -> (i32, i32) {
    %c0_i32 = arith.constant 0 : i32
    %c0_i32_0 = arith.constant 0 : i32
    return %arg0, %c0_i32 : i32, i32
  }
  func.func @transform_1(%arg0: i32) -> (i32, i32) {
    %c0_i32 = arith.constant 0 : i32
    %c0_i32_0 = arith.constant 0 : i32
    %c0_i32_1 = arith.constant 0 : i32
    return %c0_i32, %c0_i32_0 : i32, i32
  }
  func.func @transform_2(%arg0: i32) -> (i32, i32) {
    %c0_i32 = arith.constant 0 : i32
    %c0_i32_0 = arith.constant 0 : i32
    %c0_i32_1 = arith.constant 0 : i32
    return %c0_i32, %c0_i32_0 : i32, i32
  }
  func.func @transform_3(%arg0: i32) -> (i32, i32) {
    %c0_i32 = arith.constant 0 : i32
    %c0_i32_0 = arith.constant 0 : i32
    %c0_i32_1 = arith.constant 0 : i32
    return %c0_i32, %c0_i32_0 : i32, i32
  }
  func.func @transform_4(%arg0: i32) -> (i32, i32) {
    %c0_i32 = arith.constant 0 : i32
    %c0_i32_0 = arith.constant 0 : i32
    return %arg0, %c0_i32 : i32, i32
  }
}

</mosaic_0001>

<bundles_post_ra>
// kernel: tpu_custom_call.1
= control target key start
LH: loop header
LB: loop body
LE: loop exit
PB: predicated region body
PF: predicated region fallthrough
CT: control target
= control target key end

     0   :  { %s1462_s15 = smov 0   ;;  %s2162_s0 = inlined_call_operand.vmem [shape: f32[1024,16], index: 0, kind: input, shape index: {}]   ;;  %s2163_s1 = inlined_call_operand.vmem [shape: f32[32,264], index: 1, kind: input, shape index: {}]   ;;  %s2164_s2 = inlined_call_operand.vmem [shape: f32[128,8], index: 2, kind: input, shape index: {}]   ;;  %s2165_s3 = inlined_call_operand.vmem [shape: f32[1,8], index: 3, kind: input, shape index: {}]   ;;  %s2166_s4 = inlined_call_operand.vmem [shape: f32[1024,8], index: 4, kind: output, shape index: {}]  }
   0x1 LB: > { %s1291_s16 = sadd.s32 4294967295, %s1434_s15   ;;  %p1295_p0 = scmp.ge.s32.totalorder %s1434_s15, 1  ;;  %s1434_s15 = sphi %s1462_s15, %s14_s15  }
   0x2   : > { %p163_p1 = scmp.lt.s32.totalorder %s1434_s15, 5 }
   0x4   : > { %p164_p2 = pnand %p1295_p0, %p163_p1 }
   0x5   : > { %s1296_s17 = sshll.u32 (!%p164_p2), %s1291_s16, 5  ;;  %s1436_s22 = smov (!%p164_p2), 16  }
   0x6   : > { %167 = sbr.rel (%p164_p2) target bundleno = 661 (0x295), region = 36  ;;  %p190_p3 = scmp.lt.s32.totalorder (!%p164_p2), %s1296_s17, 127 }
   0xb   : > { %s2168_s17 = smov (!%p190_p3, %s1296_s17), 127  ;;  %v435_v8 = vld [vmem:[%s2163_s1 + $0x48] sm:$0xff]  ;;  %v432_v10 = vld [vmem:[%s2163_s1 + $0x30] sm:$0xff]  ;;  %v429_v11 = vld [vmem:[%s2163_s1 + $0x18] sm:$0xff]  ;;  %vm393_vm0 = vcmask 130048   ;;  %vm438_vm1 = vcmask 261120  }
   0xc   : > { %s1297_s18 = sshll.u32 %s2168_s17, 3  ;;  %1398 = vmatpush.msra.mxu1 %v435_v8  ;;  %547 = vmatpush.msra.mxu0 %v435_v8  ;;  %v426_v31 = vld [vmem:[%s2163_s1] sm:$0xff]  ;;  %v436_v32 = vld [vmem:[%s2163_s1 + $0x50] sm:$0xff]  ;;  %v437_v33 = vld [vmem:[%s2163_s1 + $0x58] sm:$0xff]  ;;  %vm1202_vm3 = vcmask 64512  }
   0xd   : > { %s1478_s21 = scalar_lea.vmem %s2162_s0, %s1297_s18  ;;  %v433_v34 = vld [vmem:[%s2163_s1 + $0x38] sm:$0xff]  ;;  %773 = vmatpush.msra.mxu2 %v437_v33  ;;  %v434_v35 = vld [vmem:[%s2163_s1 + $0x40] sm:$0xff]  ;;  %v431_v39 = vld [vmem:[%s2163_s1 + $0x28] sm:$0xff]  ;;  %s1970_s13 = scalar_lea.vmem %s2166_s4, %s1297_s18 }
   0xe   : > { %v1481_v0 = vld [vmem:[%s1478_s21 + $0xf8] sm:$0xff]  ;;  %v1484_v1 = vld [vmem:[%s1478_s21 + $0x8] sm:$0xff]  ;;  %v1498_v6 = vld [vmem:[%s1478_s21] sm:$0xff]  ;;  %1399 = vmatpush.msra.mxu1 %v432_v10  ;;  %548 = vmatpush.msra.mxu0 %v432_v10 }
   0xf   : > { %v264_v2 = vmul.f32 %v1481_v0, %v1481_v0  ;;  %v234_v3 = vmul.f32 %v1484_v1, %v1484_v1  ;;  %v1491_v4 = vld [vmem:[%s1478_s21 + $0x18] sm:$0xff]  ;;  %v1501_v7 = vld [vmem:[%s1478_s21 + $0x10] sm:$0xff]  ;;  %v1508_v9 = vld [vmem:[%s1478_s21 + $0x20] sm:$0xff]  ;;  %v233_v12 = vmul.f32 %v1498_v6, %v1498_v6  ;;  %774 = vmatpush.msra.mxu2 %v434_v35 }
  0x10   : > { %v236_v5 = vmul.f32 %v1491_v4, %v1491_v4  ;;  %v235_v13 = vmul.f32 %v1501_v7, %v1501_v7  ;;  %v237_v14 = vmul.f32 %v1508_v9, %v1508_v9  ;;  %1400 = vmatpush.msra.mxu1 %v429_v11  ;;  %549 = vmatpush.msra.mxu0 %v429_v11  ;;  %v1525_v15 = vld [vmem:[%s1478_s21 + $0x28] sm:$0xff]  ;;  %v1528_v16 = vld [vmem:[%s1478_s21 + $0x30] sm:$0xff]  ;;  %v1532_v17 = vld [vmem:[%s1478_s21 + $0x38] sm:$0xff] }
  0x11   : > { %359 = vrot.lane.b32.xlu0 %v264_v2, %s1436_s22  ;;  %299 = vrot.lane.b32.xlu1 %v234_v3, %s1436_s22  ;;  %v238_v18 = vmul.f32 %v1525_v15, %v1525_v15  ;;  %v239_v19 = vmul.f32 %v1528_v16, %v1528_v16  ;;  %v240_v20 = vmul.f32 %v1532_v17, %v1532_v17  ;;  %v1543_v21 = vld [vmem:[%s1478_s21 + $0x40] sm:$0xff]  ;;  %v1546_v22 = vld [vmem:[%s1478_s21 + $0x48] sm:$0xff] }
  0x12   : > { %303 = vrot.lane.b32.xlu2 %v236_v5, %s1436_s22  ;;  %v1550_v23 = vld [vmem:[%s1478_s21 + $0x50] sm:$0xff]  ;;  %v241_v24 = vmul.f32 %v1543_v21, %v1543_v21  ;;  %v242_v25 = vmul.f32 %v1546_v22, %v1546_v22  ;;  %v1561_v27 = vld [vmem:[%s1478_s21 + $0x58] sm:$0xff]  ;;  %v1564_v28 = vld [vmem:[%s1478_s21 + $0x60] sm:$0xff]  ;;  %1401 = vmatpush.msra.mxu1 %v426_v31 }
  0x13   : > { %v243_v26 = vmul.f32 %v1550_v23, %v1550_v23  ;;  %v244_v29 = vmul.f32 %v1561_v27, %v1561_v27  ;;  %v245_v30 = vmul.f32 %v1564_v28, %v1564_v28  ;;  %550 = vmatpush.msra.mxu0 %v426_v31  ;;  %v1589_v36 = vld [vmem:[%s1478_s21 + $0x70] sm:$0xff]  ;;  %v430_v38 = vld [vmem:[%s2163_s1 + $0x20] sm:$0xff]  ;;  %775 = vmatpush.msra.mxu2 %v431_v39  ;;  %v427_v40 = vld [vmem:[%s2163_s1 + $0x8] sm:$0xff] }
  0x14   : > { %660 = vmatpush.msrb.mxu1 %v436_v32  ;;  %v247_v37 = vmul.f32 %v1589_v36, %v1589_v36  ;;  %v428_v41 = vld [vmem:[%s2163_s1 + $0x10] sm:$0xff]  ;;  %v1607_v42 = vld [vmem:[%s1478_s21 + $0x78] sm:$0xff]  ;;  %v1613_v44 = vld [vmem:[%s1478_s21 + $0x68] sm:$0xff] }
  0x15   : > { %776 = vmatpush.msra.mxu2 %v428_v41  ;;  %v248_v43 = vmul.f32 %v1607_v42, %v1607_v42  ;;  %v246_v45 = vmul.f32 %v1613_v44, %v1613_v44  ;;  %v1619_v46 = vld [vmem:[%s1478_s21 + $0x88] sm:$0xff]  ;;  %v1631_v50 = vld [vmem:[%s1478_s21 + $0x90] sm:$0xff]  ;;  %v1642_v55 = vld [vmem:[%s1478_s21 + $0x80] sm:$0xff] }
  0x16   : > { %661 = vmatpush.msrb.mxu1 %v433_v34  ;;  %v250_v47 = vmul.f32 %v1619_v46, %v1619_v46  ;;  %v251_v51 = vmul.f32 %v1631_v50, %v1631_v50  ;;  %v249_v56 = vmul.f32 %v1642_v55, %v1642_v55  ;;  %v1653_v58 = vld [vmem:[%s1478_s21 + $0xa0] sm:$0xff]  ;;  %v1664_v63 = vld [vmem:[%s1478_s21 + $0xa8] sm:$0xff]  ;;  %v1675_v2 = vld [vmem:[%s1478_s21 + $0x98] sm:$0xff] }
  0x17   : > { %v253_v60 = vmul.f32 %v1653_v58, %v1653_v58  ;;  %v252_v5 = vmul.f32 %v1675_v2, %v1675_v2  ;;  %v1772_v39 = vld [vmem:[%s1478_s21 + $0xf0] sm:$0xff]  ;;  %v982_v41 = vld [vmem:[%s2164_s2 + $0x60] sm:$0xff] }
  0x18   : > { %662 = vmatpush.msrb.mxu1 %v430_v38  ;;  %v984_v38 = vld [vmem:[%s2164_s2 + $0x70] sm:$0xff] }
  0x19   : > { %297 = vrot.lane.b32.xlu0 %v233_v12, %s1436_s22  ;;  %301 = vrot.lane.b32.xlu1 %v235_v13, %s1436_s22 }
  0x1a   : > { %305 = vrot.lane.b32.xlu2 %v237_v14, %s1436_s22  ;;  %663 = vmatpush.msrb.mxu1 %v427_v40  ;;  %v1708_v14 = vld [vmem:[%s1478_s21 + $0xb0] sm:$0xff] }
  0x21   : > { %307 = vrot.lane.b32.xlu0 %v238_v18, %s1436_s22  ;;  %309 = vrot.lane.b32.xlu1 %v239_v19, %s1436_s22  ;;  %v255_v18 = vmul.f32 %v1708_v14, %v1708_v14 }
  0x22   : > { %311 = vrot.lane.b32.xlu2 %v240_v20, %s1436_s22 }
  0x29   : > { %313 = vrot.lane.b32.xlu0 %v241_v24, %s1436_s22  ;;  %315 = vrot.lane.b32.xlu1 %v242_v25, %s1436_s22 }
  0x2a   : > { %317 = vrot.lane.b32.xlu2 %v243_v26, %s1436_s22 }
  0x31   : > { %319 = vrot.lane.b32.xlu0 %v244_v29, %s1436_s22  ;;  %321 = vrot.lane.b32.xlu1 %v245_v30, %s1436_s22 }
  0x32   : > { %323 = vrot.lane.b32.xlu2 %v246_v45, %s1436_s22 }
  0x39   : > { %325 = vrot.lane.b32.xlu0 %v247_v37, %s1436_s22  ;;  %327 = vrot.lane.b32.xlu1 %v248_v43, %s1436_s22  ;;  %v263_v43 = vmul.f32 %v1772_v39, %v1772_v39 }
  0x3a   : > { %329 = vrot.lane.b32.xlu2 %v249_v56, %s1436_s22 }
  0x41   : > { %331 = vrot.lane.b32.xlu0 %v250_v47, %s1436_s22  ;;  %333 = vrot.lane.b32.xlu1 %v251_v51, %s1436_s22  ;;  %v981_v47 = vld [vmem:[%s2164_s2 + $0x58] sm:$0xff] }
  0x42   : > { %335 = vrot.lane.b32.xlu2 %v252_v5, %s1436_s22  ;;  %v970_v5 = vld [vmem:[%s2164_s2] sm:$0xff] }
  0x49   : > { %337 = vrot.lane.b32.xlu0 %v253_v60, %s1436_s22 }
  0x4a   : > { %341 = vrot.lane.b32.xlu2 %v255_v18, %s1436_s22 }
  0x6c   : > { %v304_v62 = vpop.permute.xlu2 %303 }
  0x74   : > { %v306_v3 = vpop.permute.xlu2 %305 }
  0x83   : > { %v360_v48 = vpop.permute.xlu0 %359  ;;  %v300_v54 = vpop.permute.xlu1 %299 }
  0x84   : > { %v1626_v49 = vsel %vm393_vm0, %v1481_v0, %v360_v48  ;;  %v395_v57 = vsel %vm393_vm0, %v1484_v1, %v300_v54  ;;  %v254_v0 = vmul.f32 %v1664_v63, %v1664_v63  ;;  %v397_v1 = vsel %vm393_vm0, %v1491_v4, %v304_v62  ;;  %v1686_v4 = vld [vmem:[%s1478_s21 + $0xb8] sm:$0xff]  ;;  %v980_v48 = vld [vmem:[%s2164_s2 + $0x50] sm:$0xff] }
  0x85   : > { %1331 = vmatmul.msk.f32.vlgmr.msra.gmra.mxu1 %vm438_vm1, %v1626_v49  ;;  %v256_v8 = vmul.f32 %v1686_v4, %v1686_v4 }
  0x86   : > { %339 = vrot.lane.b32.xlu1 %v254_v0, %s1436_s22  ;;  %v973_v0 = vld [vmem:[%s2164_s2 + $0x18] sm:$0xff] }
  0x87   : > { %343 = vrot.lane.b32.xlu0 %v256_v8, %s1436_s22 }
  0x8b   : > { %v298_v52 = vpop.permute.xlu0 %297  ;;  %v302_v59 = vpop.permute.xlu1 %301 }
  0x8c   : > { %v394_v53 = vsel %vm393_vm0, %v1498_v6, %v298_v52  ;;  %v396_v61 = vsel %vm393_vm0, %v1501_v7, %v302_v59  ;;  %v398_v6 = vsel %vm393_vm0, %v1508_v9, %v306_v3  ;;  %v1697_v9 = vld [vmem:[%s1478_s21 + $0xc0] sm:$0xff]  ;;  %v976_v59 = vld [vmem:[%s2164_s2 + $0x30] sm:$0xff] }
  0x8d   : > { %1300 = vmatmul.msk.f32.vlgmr.msra.gmra.mxu0 %vm438_vm1, %v394_v53  ;;  %1332 = vmatmul.msk.f32.vlgmr.msrb.gmra.mxu1 %vm438_vm1, %v394_v53  ;;  %v257_v12 = vmul.f32 %v1697_v9, %v1697_v9  ;;  %v1795_v52 = vld [vmem:[%s1478_s21 + $0xe0] sm:$0xff] }
  0x8e   : > { %1364 = vmatmul.msk.f32.vlgmr.msra.gmra.mxu2 %vm438_vm1, %v394_v53  ;;  %v978_v53 = vld [vmem:[%s2164_s2 + $0x40] sm:$0xff]  ;;  %v261_v54 = vmul.f32 %v1795_v52, %v1795_v52 }
  0x8f   : > { %345 = vrot.lane.b32.xlu1 %v257_v12, %s1436_s22 }
  0x93   : > { %v308_v7 = vpop.permute.xlu0 %307  ;;  %v310_v11 = vpop.permute.xlu1 %309 }
  0x94   : > { %v399_v10 = vsel %vm393_vm0, %v1525_v15, %v308_v7  ;;  %v400_v13 = vsel %vm393_vm0, %v1528_v16, %v310_v11  ;;  %v312_v15 = vpop.permute.xlu2 %311  ;;  %v1719_v16 = vld [vmem:[%s1478_s21 + $0xd0] sm:$0xff] }
  0x95   : > { %1301 = vmatmul.msk.f32.gmra.mxu0 %vm438_vm1, %v395_v57  ;;  %1333 = vmatmul.msk.f32.gmra.mxu1 %vm438_vm1, %v395_v57  ;;  %v401_v19 = vsel %vm393_vm0, %v1532_v17, %v312_v15  ;;  %v259_v24 = vmul.f32 %v1719_v16, %v1719_v16  ;;  %v1730_v17 = vld [vmem:[%s1478_s21 + $0xd8] sm:$0xff] }
  0x96   : > { %1365 = vmatmul.msk.f32.gmra.mxu2 %vm438_vm1, %v395_v57  ;;  %v260_v29 = vmul.f32 %v1730_v17, %v1730_v17  ;;  %v977_v57 = vld [vmem:[%s2164_s2 + $0x38] sm:$0xff] }
  0x97   : > { %349 = vrot.lane.b32.xlu0 %v259_v24, %s1436_s22 }
  0x98   : > { %351 = vrot.lane.b32.xlu1 %v260_v29, %s1436_s22 }
  0x9b   : > { %v314_v20 = vpop.permute.xlu0 %313  ;;  %v316_v26 = vpop.permute.xlu1 %315 }
  0x9c   : > { %v402_v25 = vsel %vm393_vm0, %v1543_v21, %v314_v20  ;;  %v403_v30 = vsel %vm393_vm0, %v1546_v22, %v316_v26  ;;  %v1741_v21 = vld [vmem:[%s1478_s21 + $0xc8] sm:$0xff]  ;;  %v318_v31 = vpop.permute.xlu2 %317 }
  0x9d   : > { %1302 = vmatmul.msk.f32.gmra.mxu0 %vm438_vm1, %v396_v61  ;;  %1334 = vmatmul.msk.f32.gmra.mxu1 %vm438_vm1, %v396_v61  ;;  %v258_v32 = vmul.f32 %v1741_v21, %v1741_v21  ;;  %v404_v33 = vsel %vm393_vm0, %v1550_v23, %v318_v31  ;;  %v1752_v22 = vld [vmem:[%s1478_s21 + $0xe8] sm:$0xff]  ;;  %v985_v23 = vld [vmem:[%s2164_s2 + $0x78] sm:$0xff] }
  0x9e   : > { %1366 = vmatmul.msk.f32.gmra.mxu2 %vm438_vm1, %v396_v61  ;;  %v262_v35 = vmul.f32 %v1752_v22, %v1752_v22  ;;  %1402 = vmatpush.msra.mxu3 %v985_v23  ;;  %v974_v61 = vld [vmem:[%s2164_s2 + $0x20] sm:$0xff] }
  0x9f   : > { %347 = vrot.lane.b32.xlu2 %v258_v32, %s1436_s22  ;;  %986 = vmatpush.msrb.mxu0 %v985_v23 }
  0xa0   : > { %355 = vrot.lane.b32.xlu0 %v262_v35, %s1436_s22  ;;  %1403 = vmatpush.msra.mxu3 %v984_v38 }
  0xa1   : > { %987 = vmatpush.msrb.mxu0 %v984_v38  ;;  %357 = vrot.lane.b32.xlu1 %v263_v43, %s1436_s22 }
  0xa3   : > { %v320_v34 = vpop.permute.xlu0 %319  ;;  %v322_v40 = vpop.permute.xlu1 %321 }
  0xa4   : > { %v405_v37 = vsel %vm393_vm0, %v1561_v27, %v320_v34  ;;  %v983_v27 = vld [vmem:[%s2164_s2 + $0x68] sm:$0xff]  ;;  %v406_v45 = vsel %vm393_vm0, %v1564_v28, %v322_v40  ;;  %v324_v51 = vpop.permute.xlu2 %323 }
  0xa5   : > { %1303 = vmatmul.msk.f32.gmra.mxu0 %vm438_vm1, %v397_v1  ;;  %1335 = vmatmul.msk.f32.gmra.mxu1 %vm438_vm1, %v397_v1  ;;  %v979_v28 = vld [vmem:[%s2164_s2 + $0x48] sm:$0xff]  ;;  %v407_v56 = vsel %vm393_vm0, %v1613_v44, %v324_v51 }
  0xa6   : > { %1367 = vmatmul.msk.f32.gmra.mxu2 %vm438_vm1, %v397_v1  ;;  %1404 = vmatpush.msra.mxu3 %v983_v27  ;;  %v975_v44 = vld [vmem:[%s2164_s2 + $0x28] sm:$0xff]  ;;  %v972_v1 = vld [vmem:[%s2164_s2 + $0x10] sm:$0xff] }
  0xa7   : > { %988 = vmatpush.msrb.mxu0 %v983_v27  ;;  %353 = vrot.lane.b32.xlu2 %v261_v54, %s1436_s22 }
  0xa8   : > { %1405 = vmatpush.msra.mxu3 %v982_v41 }
  0xa9   : > { %989 = vmatpush.msrb.mxu0 %v982_v41 }
  0xaa   : > { %1406 = vmatpush.msra.mxu3 %v981_v47 }
  0xab   : > { %990 = vmatpush.msrb.mxu0 %v981_v47  ;;  %v326_v60 = vpop.permute.xlu0 %325  ;;  %v328_v3 = vpop.permute.xlu1 %327 }
  0xac   : > { %1407 = vmatpush.msra.mxu3 %v980_v48  ;;  %v408_v62 = vsel %vm393_vm0, %v1589_v36, %v326_v60  ;;  %v971_v36 = vld [vmem:[%s2164_s2 + $0x8] sm:$0xff]  ;;  %v409_v7 = vsel %vm393_vm0, %v1607_v42, %v328_v3  ;;  %v330_v8 = vpop.permute.xlu2 %329 }
  0xad   : > { %1304 = vmatmul.msk.f32.gmra.mxu0 %vm438_vm1, %v398_v6  ;;  %1336 = vmatmul.msk.f32.gmra.mxu1 %vm438_vm1, %v398_v6  ;;  %v410_v12 = vsel %vm393_vm0, %v1642_v55, %v330_v8 }
  0xae   : > { %1368 = vmatmul.msk.f32.gmra.mxu2 %vm438_vm1, %v398_v6  ;;  %1408 = vmatpush.msra.mxu3 %v979_v28 }
  0xaf   : > { %991 = vmatpush.msrb.mxu0 %v980_v48 }
  0xb0   : > { %1409 = vmatpush.msra.mxu3 %v978_v53 }
  0xb1   : > { %992 = vmatpush.msrb.mxu0 %v979_v28 }
  0xb2   : > { %1410 = vmatpush.msra.mxu3 %v977_v57 }
  0xb3   : > { %993 = vmatpush.msrb.mxu0 %v978_v53  ;;  %v332_v42 = vpop.permute.xlu0 %331  ;;  %v334_v55 = vpop.permute.xlu1 %333 }
  0xb4   : > { %1411 = vmatpush.msra.mxu3 %v976_v59  ;;  %v411_v18 = vsel %vm393_vm0, %v1619_v46, %v332_v42  ;;  %v412_v24 = vsel %vm393_vm0, %v1631_v50, %v334_v55  ;;  %v336_v29 = vpop.permute.xlu2 %335 }
  0xb5   : > { %1305 = vmatmul.msk.f32.gmra.mxu0 %vm438_vm1, %v399_v10  ;;  %1337 = vmatmul.msk.f32.gmra.mxu1 %vm438_vm1, %v399_v10  ;;  %v413_v32 = vsel %vm393_vm0, %v1675_v2, %v336_v29 }
  0xb6   : > { %1369 = vmatmul.msk.f32.gmra.mxu2 %vm438_vm1, %v399_v10  ;;  %1412 = vmatpush.msra.mxu3 %v975_v44 }
  0xb7   : > { %994 = vmatpush.msrb.mxu0 %v977_v57 }
  0xb8   : > { %1413 = vmatpush.msra.mxu3 %v974_v61 }
  0xb9   : > { %995 = vmatpush.msrb.mxu0 %v976_v59 }
  0xba   : > { %1414 = vmatpush.msra.mxu3 %v973_v0 }
  0xbb   : > { %996 = vmatpush.msrb.mxu0 %v975_v44  ;;  %v338_v35 = vpop.permute.xlu0 %337 }
  0xbc   : > { %1415 = vmatpush.msra.mxu3 %v972_v1  ;;  %v414_v38 = vsel %vm393_vm0, %v1653_v58, %v338_v35  ;;  %v342_v51 = vpop.permute.xlu2 %341 }
  0xbd   : > { %1306 = vmatmul.msk.f32.gmra.mxu0 %vm438_vm1, %v400_v13  ;;  %1338 = vmatmul.msk.f32.gmra.mxu1 %vm438_vm1, %v400_v13 }
  0xbe   : > { %1370 = vmatmul.msk.f32.gmra.mxu2 %vm438_vm1, %v400_v13  ;;  %1416 = vmatpush.msra.mxu3 %v971_v36 }
  0xbf   : > { %997 = vmatpush.msrb.mxu0 %v974_v61 }
  0xc0   : > { %1417 = vmatpush.msra.mxu3 %v970_v5 }
  0xc1   : > { %998 = vmatpush.msrb.mxu0 %v973_v0 }
  0xc3   : > { %999 = vmatpush.msrb.mxu0 %v972_v1 }
  0xc5   : > { %1307 = vmatmul.msk.f32.gmra.mxu0 %vm438_vm1, %v401_v19  ;;  %1339 = vmatmul.msk.f32.gmra.mxu1 %vm438_vm1, %v401_v19 }
  0xc6   : > { %1371 = vmatmul.msk.f32.gmra.mxu2 %vm438_vm1, %v401_v19  ;;  %1000 = vmatpush.msrb.mxu0 %v971_v36 }
  0xc8   : > { %1001 = vmatpush.msrb.mxu0 %v970_v5 }
  0xcd   : > { %1308 = vmatmul.msk.f32.gmra.mxu0 %vm438_vm1, %v402_v25  ;;  %1340 = vmatmul.msk.f32.gmra.mxu1 %vm438_vm1, %v402_v25 }
  0xce   : > { %1372 = vmatmul.msk.f32.gmra.mxu2 %vm438_vm1, %v402_v25 }
  0xd5   : > { %1309 = vmatmul.msk.f32.gmra.mxu0 %vm438_vm1, %v403_v30  ;;  %1341 = vmatmul.msk.f32.gmra.mxu1 %vm438_vm1, %v403_v30 }
  0xd6   : > { %1373 = vmatmul.msk.f32.gmra.mxu2 %vm438_vm1, %v403_v30 }
  0xdd   : > { %1310 = vmatmul.msk.f32.gmra.mxu0 %vm438_vm1, %v404_v33  ;;  %1342 = vmatmul.msk.f32.gmra.mxu1 %vm438_vm1, %v404_v33 }
  0xde   : > { %1374 = vmatmul.msk.f32.gmra.mxu2 %vm438_vm1, %v404_v33 }
  0xe5   : > { %1311 = vmatmul.msk.f32.gmra.mxu0 %vm438_vm1, %v405_v37  ;;  %1343 = vmatmul.msk.f32.gmra.mxu1 %vm438_vm1, %v405_v37 }
  0xe6   : > { %1375 = vmatmul.msk.f32.gmra.mxu2 %vm438_vm1, %v405_v37 }
  0xed   : > { %1312 = vmatmul.msk.f32.gmra.mxu0 %vm438_vm1, %v406_v45  ;;  %1344 = vmatmul.msk.f32.gmra.mxu1 %vm438_vm1, %v406_v45 }
  0xee   : > { %1376 = vmatmul.msk.f32.gmra.mxu2 %vm438_vm1, %v406_v45 }
  0xf5   : > { %1313 = vmatmul.msk.f32.gmra.mxu0 %vm438_vm1, %v407_v56  ;;  %1345 = vmatmul.msk.f32.gmra.mxu1 %vm438_vm1, %v407_v56 }
  0xf6   : > { %1377 = vmatmul.msk.f32.gmra.mxu2 %vm438_vm1, %v407_v56  ;;  %v416_v56 = vsel %vm393_vm0, %v1708_v14, %v342_v51 }
  0xf8   : > { %v340_v41 = vpop.permute.xlu1 %339 }
  0xf9   : > { %v415_v47 = vsel %vm393_vm0, %v1664_v63, %v340_v41  ;;  %v344_v60 = vpop.permute.xlu0 %343  ;;  %v348_v55 = vpop.permute.xlu2 %347 }
  0xfa   : > { %v417_v0 = vsel %vm393_vm0, %v1686_v4, %v344_v60 }
  0xfd   : > { %1314 = vmatmul.msk.f32.gmra.mxu0 %vm438_vm1, %v408_v62  ;;  %1346 = vmatmul.msk.f32.gmra.mxu1 %vm438_vm1, %v408_v62 }
  0xfe   : > { %1378 = vmatmul.msk.f32.gmra.mxu2 %vm438_vm1, %v408_v62 }
 0x101   : > { %v346_v3 = vpop.permute.xlu1 %345  ;;  %v354_v41 = vpop.permute.xlu2 %353 }
 0x102   : > { %v1837_v6 = vpop.f32.mrf.mxu1 }
 0x105   : > { %1315 = vmatmul.msk.f32.gmra.mxu0 %vm438_vm1, %v409_v7  ;;  %1347 = vmatmul.msk.f32.gmra.mxu1 %vm438_vm1, %v409_v7 }
 0x106   : > { %1379 = vmatmul.msk.f32.gmra.mxu2 %vm438_vm1, %v409_v7 }
 0x109   : > { %v350_v29 = vpop.permute.xlu0 %349 }
 0x10a   : > { %v1844_v10 = vpop.f32.mrf.mxu0  ;;  %v1846_v11 = vpop.f32.mrf.mxu1 }
 0x10b   : > { %v352_v35 = vpop.permute.xlu1 %351 }
 0x10d   : > { %1316 = vmatmul.msk.f32.gmra.mxu0 %vm438_vm1, %v410_v12  ;;  %1348 = vmatmul.msk.f32.gmra.mxu1 %vm438_vm1, %v410_v12 }
 0x10e   : > { %1380 = vmatmul.msk.f32.gmra.mxu2 %vm438_vm1, %v410_v12  ;;  %v418_v12 = vsel %vm393_vm0, %v1697_v9, %v346_v3 }
 0x111   : > { %v1887_v63 = vpop.f32.mrf.mxu2 }
 0x112   : > { %v1853_v13 = vpop.f32.mrf.mxu0  ;;  %v1855_v15 = vpop.f32.mrf.mxu1 }
 0x115   : > { %1317 = vmatmul.msk.f32.gmra.mxu0 %vm438_vm1, %v411_v18  ;;  %1349 = vmatmul.msk.f32.gmra.mxu1 %vm438_vm1, %v411_v18 }
 0x116   : > { %1381 = vmatmul.msk.f32.gmra.mxu2 %vm438_vm1, %v411_v18 }
 0x119   : > { %v1894_v5 = vpop.f32.mrf.mxu2 }
 0x11a   : > { %v558_v19 = vpop.f32.mrf.mxu0  ;;  %v671_v20 = vpop.f32.mrf.mxu1 }
 0x11b   : > { %v876_v25 = vmul.f32 %v558_v19, %v558_v19 }
 0x11d   : > { %v908_v26 = vmul.f32 0.5, %v876_v25  ;;  %1318 = vmatmul.msk.f32.gmra.mxu0 %vm438_vm1, %v412_v24  ;;  %1350 = vmatmul.msk.f32.gmra.mxu1 %vm438_vm1, %v412_v24 }
 0x11e   : > { %1382 = vmatmul.msk.f32.gmra.mxu2 %vm438_vm1, %v412_v24  ;;  %v419_v24 = vsel %vm393_vm0, %v1741_v21, %v348_v55 }
 0x11f   : > { %v940_v46 = vsub.f32 %v908_v26, %v671_v20 }
 0x121   : > { %1008 = vmatmul.f32.vlgmr.msra.gmra.mxu3 %v940_v46  ;;  %v1903_v25 = vpop.f32.mrf.mxu2 }
 0x122   : > { %v561_v30 = vpop.f32.mrf.mxu0  ;;  %v674_v31 = vpop.f32.mrf.mxu1 }
 0x123   : > { %v877_v33 = vmul.f32 %v561_v30, %v561_v30 }
 0x125   : > { %v909_v34 = vmul.f32 0.5, %v877_v33  ;;  %1319 = vmatmul.msk.f32.gmra.mxu0 %vm438_vm1, %v413_v32  ;;  %1351 = vmatmul.msk.f32.gmra.mxu1 %vm438_vm1, %v413_v32 }
 0x126   : > { %1383 = vmatmul.msk.f32.gmra.mxu2 %vm438_vm1, %v413_v32  ;;  %v420_v32 = vsel %vm393_vm0, %v1719_v16, %v350_v29 }
 0x127   : > { %v941_v50 = vsub.f32 %v909_v34, %v674_v31 }
 0x129   : > { %1011 = vmatmul.f32.gmra.mxu3 %v941_v50  ;;  %v1910_v21 = vpop.f32.mrf.mxu2 }
 0x12a   : > { %v564_v37 = vpop.f32.mrf.mxu0  ;;  %v677_v23 = vpop.f32.mrf.mxu1 }
 0x12b   : > { %v878_v27 = vmul.f32 %v564_v37, %v564_v37 }
 0x12d   : > { %v910_v40 = vmul.f32 0.5, %v878_v27  ;;  %1320 = vmatmul.msk.f32.gmra.mxu0 %vm438_vm1, %v414_v38  ;;  %1352 = vmatmul.msk.f32.gmra.mxu1 %vm438_vm1, %v414_v38 }
 0x12e   : > { %1384 = vmatmul.msk.f32.gmra.mxu2 %vm438_vm1, %v414_v38  ;;  %v421_v38 = vsel %vm393_vm0, %v1730_v17, %v352_v35  ;;  %v1135_v35 = vlaneseq }
 0x12f   : > { %v942_v2 = vsub.f32 %v910_v40, %v677_v23 }
 0x131   : > { %1014 = vmatmul.f32.gmra.mxu3 %v942_v2  ;;  %v1920_v40 = vpop.f32.mrf.mxu2 }
 0x132   : > { %v567_v43 = vpop.f32.mrf.mxu0  ;;  %v680_v45 = vpop.f32.mrf.mxu1 }
 0x133   : > { %v879_v48 = vmul.f32 %v567_v43, %v567_v43 }
 0x135   : > { %v911_v28 = vmul.f32 0.5, %v879_v48  ;;  %1321 = vmatmul.msk.f32.gmra.mxu0 %vm438_vm1, %v415_v47  ;;  %1353 = vmatmul.msk.f32.gmra.mxu1 %vm438_vm1, %v415_v47 }
 0x136   : > { %1385 = vmatmul.msk.f32.gmra.mxu2 %vm438_vm1, %v415_v47  ;;  %v422_v47 = vsel %vm393_vm0, %v1795_v52, %v354_v41 }
 0x137   : > { %v943_v58 = vsub.f32 %v911_v28, %v680_v45 }
 0x139   : > { %1017 = vmatmul.f32.gmra.mxu3 %v943_v58  ;;  %v356_v58 = vpop.permute.xlu0 %355  ;;  %v1927_v51 = vpop.f32.mrf.mxu2 }
 0x13a   : > { %v570_v53 = vpop.f32.mrf.mxu0  ;;  %v683_v54 = vpop.f32.mrf.mxu1 }
 0x13b   : > { %v880_v57 = vmul.f32 %v570_v53, %v570_v53 }
 0x13d   : > { %v912_v59 = vmul.f32 0.5, %v880_v57  ;;  %1322 = vmatmul.msk.f32.gmra.mxu0 %vm438_vm1, %v416_v56  ;;  %1354 = vmatmul.msk.f32.gmra.mxu1 %vm438_vm1, %v416_v56 }
 0x13e   : > { %1386 = vmatmul.msk.f32.gmra.mxu2 %vm438_vm1, %v416_v56  ;;  %v423_v56 = vsel %vm393_vm0, %v1752_v22, %v356_v58 }
 0x13f   : > { %v944_v44 = vsub.f32 %v912_v59, %v683_v54 }
 0x141   : > { %1020 = vmatmul.f32.gmra.mxu3 %v944_v44  ;;  %v358_v44 = vpop.permute.xlu1 %357 }
 0x142   : > { %v573_v61 = vpop.f32.mrf.mxu0  ;;  %v686_v62 = vpop.f32.mrf.mxu1 }
 0x143   : > { %v881_v1 = vmul.f32 %v573_v61, %v573_v61 }
 0x145   : > { %v913_v14 = vmul.f32 0.5, %v881_v1  ;;  %1323 = vmatmul.msk.f32.gmra.mxu0 %vm438_vm1, %v417_v0  ;;  %1355 = vmatmul.msk.f32.gmra.mxu1 %vm438_vm1, %v417_v0  ;;  %v1938_v1 = vpop.f32.mrf.mxu2 }
 0x146   : > { %1387 = vmatmul.msk.f32.gmra.mxu2 %vm438_vm1, %v417_v0  ;;  %v874_v0 = vmul.f32 %v1844_v10, %v1844_v10  ;;  %v875_v10 = vmul.f32 %v1853_v13, %v1853_v13 }
 0x147   : > { %v945_v36 = vsub.f32 %v913_v14, %v686_v62  ;;  %v424_v62 = vsel %vm393_vm0, %v1772_v39, %v358_v44 }
 0x149   : > { %1023 = vmatmul.f32.gmra.mxu3 %v945_v36  ;;  %v906_v36 = vmul.f32 0.5, %v874_v0 }
 0x14a   : > { %v576_v7 = vpop.f32.mrf.mxu0  ;;  %v689_v8 = vpop.f32.mrf.mxu1 }
 0x14b   : > { %v882_v42 = vmul.f32 %v576_v7, %v576_v7  ;;  %v938_v39 = vsub.f32 %v906_v36, %v1846_v11 }
 0x14d   : > { %v914_v4 = vmul.f32 0.5, %v882_v42  ;;  %1324 = vmatmul.msk.f32.gmra.mxu0 %vm438_vm1, %v418_v12  ;;  %1356 = vmatmul.msk.f32.gmra.mxu1 %vm438_vm1, %v418_v12 }
 0x14e   : > { %1388 = vmatmul.msk.f32.gmra.mxu2 %vm438_vm1, %v418_v12 }
 0x14f   : > { %v946_v18 = vsub.f32 %v914_v4, %v689_v8  ;;  %v1948_v4 = vpop.f32.mrf.mxu2 }
 0x151   : > { %1026 = vmatmul.f32.gmra.mxu3 %v946_v18  ;;  %v907_v18 = vmul.f32 0.5, %v875_v10 }
 0x152   : > { %v579_v19 = vpop.f32.mrf.mxu0  ;;  %v692_v20 = vpop.f32.mrf.mxu1 }
 0x153   : > { %v883_v26 = vmul.f32 %v579_v19, %v579_v19  ;;  %v939_v11 = vsub.f32 %v907_v18, %v1855_v15 }
 0x155   : > { %v915_v9 = vmul.f32 0.5, %v883_v26  ;;  %1325 = vmatmul.msk.f32.gmra.mxu0 %vm438_vm1, %v419_v24  ;;  %1357 = vmatmul.msk.f32.gmra.mxu1 %vm438_vm1, %v419_v24 }
 0x156   : > { %1389 = vmatmul.msk.f32.gmra.mxu2 %vm438_vm1, %v419_v24 }
 0x157   : > { %v947_v46 = vsub.f32 %v915_v9, %v692_v20 }
 0x159   : > { %1029 = vmatmul.f32.gmra.mxu3 %v947_v46 }
 0x15a   : > { %v582_v30 = vpop.f32.mrf.mxu0  ;;  %v695_v31 = vpop.f32.mrf.mxu1 }
 0x15b   : > { %v884_v33 = vmul.f32 %v582_v30, %v582_v30 }
 0x15d   : > { %v916_v34 = vmul.f32 0.5, %v884_v33  ;;  %1326 = vmatmul.msk.f32.gmra.mxu0 %vm438_vm1, %v420_v32  ;;  %1358 = vmatmul.msk.f32.gmra.mxu1 %vm438_vm1, %v420_v32 }
 0x15e   : > { %1390 = vmatmul.msk.f32.gmra.mxu2 %vm438_vm1, %v420_v32 }
 0x15f   : > { %v948_v50 = vsub.f32 %v916_v34, %v695_v31 }
 0x161   : > { %1032 = vmatmul.f32.gmra.mxu3 %v948_v50 }
 0x162   : > { %v585_v37 = vpop.f32.mrf.mxu0  ;;  %v698_v23 = vpop.f32.mrf.mxu1 }
 0x163   : > { %v885_v27 = vmul.f32 %v585_v37, %v585_v37 }
 0x165   : > { %v917_v16 = vmul.f32 0.5, %v885_v27  ;;  %1327 = vmatmul.msk.f32.gmra.mxu0 %vm438_vm1, %v421_v38  ;;  %1359 = vmatmul.msk.f32.gmra.mxu1 %vm438_vm1, %v421_v38 }
 0x166   : > { %1391 = vmatmul.msk.f32.gmra.mxu2 %vm438_vm1, %v421_v38  ;;  %v1956_v38 = vld [vmem:[%s2165_s3] ss:$0 sm:$0xff] }
 0x167   : > { %v949_v2 = vsub.f32 %v917_v16, %v698_v23  ;;  %v1958_v16 = vand.u32 127, %v1135_v35 }
 0x169   : > { %1035 = vmatmul.f32.gmra.mxu3 %v949_v2  ;;  %v1960_v2 = vpop.f32.mrf.mxu2  ;;  %vm1137_vm2 = vcmp.eq.s32.totalorder %v1958_v16, 1 }
 0x16a   : > { %v588_v43 = vpop.f32.mrf.mxu0  ;;  %v701_v45 = vpop.f32.mrf.mxu1 }
 0x16b   : > { %v886_v48 = vmul.f32 %v588_v43, %v588_v43 }
 0x16d   : > { %v918_v17 = vmul.f32 0.5, %v886_v48  ;;  %1328 = vmatmul.msk.f32.gmra.mxu0 %vm438_vm1, %v422_v47  ;;  %1360 = vmatmul.msk.f32.gmra.mxu1 %vm438_vm1, %v422_v47 }
 0x16e   : > { %1392 = vmatmul.msk.f32.gmra.mxu2 %vm438_vm1, %v422_v47 }
 0x16f   : > { %v950_v28 = vsub.f32 %v918_v17, %v701_v45 }
 0x171   : > { %1038 = vmatmul.f32.gmra.mxu3 %v950_v28 }
 0x172   : > { %v591_v53 = vpop.f32.mrf.mxu0  ;;  %v704_v54 = vpop.f32.mrf.mxu1 }
 0x173   : > { %v887_v57 = vmul.f32 %v591_v53, %v591_v53 }
 0x175   : > { %v919_v52 = vmul.f32 0.5, %v887_v57  ;;  %1329 = vmatmul.msk.f32.gmra.mxu0 %vm438_vm1, %v423_v56  ;;  %1361 = vmatmul.msk.f32.gmra.mxu1 %vm438_vm1, %v423_v56  ;;  %v1977_v57 = vpop.f32.mrf.mxu2 }
 0x176   : > { %1393 = vmatmul.msk.f32.gmra.mxu2 %vm438_vm1, %v423_v56 }
 0x177   : > { %v951_v59 = vsub.f32 %v919_v52, %v704_v54 }
 0x179   : > { %1041 = vmatmul.f32.gmra.mxu3 %v951_v59 }
 0x17a   : > { %v594_v60 = vpop.f32.mrf.mxu0  ;;  %v707_v61 = vpop.f32.mrf.mxu1 }
 0x17b   : > { %v888_v22 = vmul.f32 %v594_v60, %v594_v60 }
 0x17d   : > { %v920_v14 = vmul.f32 0.5, %v888_v22  ;;  %1330 = vmatmul.msk.f32.gmra.mxu0 %vm438_vm1, %v424_v62  ;;  %1362 = vmatmul.msk.f32.gmra.mxu1 %vm438_vm1, %v424_v62 }
 0x17e   : > { %1394 = vmatmul.msk.f32.gmra.mxu2 %vm438_vm1, %v424_v62 }
 0x17f   : > { %v952_v3 = vsub.f32 %v920_v14, %v707_v61 }
 0x181   : > { %1044 = vmatmul.f32.gmra.mxu3 %v952_v3 }
 0x182   : > { %v597_v7 = vpop.f32.mrf.mxu0  ;;  %v710_v8 = vpop.f32.mrf.mxu1 }
 0x183   : > { %v889_v12 = vmul.f32 %v597_v7, %v597_v7  ;;  %v1986_v7 = vpop.f32.mrf.mxu2 }
 0x185   : > { %v921_v42 = vmul.f32 0.5, %v889_v12  ;;  %1363 = vmatmul.msk.f32.gmra.mxu1 %vm438_vm1, %v1626_v49  ;;  %1002 = vmatmul.f32.vlgmr.msrb.gmra.mxu0 %v938_v39 }
 0x186   : > { %1395 = vmatmul.msk.f32.gmra.mxu2 %vm438_vm1, %v1626_v49 }
 0x187   : > { %v953_v55 = vsub.f32 %v921_v42, %v710_v8 }
 0x189   : > { %1047 = vmatmul.f32.gmra.mxu3 %v953_v55 }
 0x18a   : > { %v600_v19 = vpop.f32.mrf.mxu0  ;;  %v713_v20 = vpop.f32.mrf.mxu1 }
 0x18b   : > { %v890_v24 = vmul.f32 %v600_v19, %v600_v19 }
 0x18d   : > { %v922_v13 = vmul.f32 0.5, %v890_v24  ;;  %1005 = vmatmul.f32.gmra.mxu0 %v939_v11 }
 0x18f   : > { %v954_v26 = vsub.f32 %v922_v13, %v713_v20 }
 0x191   : > { %1050 = vmatmul.f32.gmra.mxu3 %v954_v26  ;;  %v1994_v26 = vpop.f32.mrf.mxu2 }
 0x192   : > { %v603_v9 = vpop.f32.mrf.mxu0  ;;  %v716_v46 = vpop.f32.mrf.mxu1 }
 0x193   : > { %v891_v29 = vmul.f32 %v603_v9, %v603_v9 }
 0x195   : > { %v923_v30 = vmul.f32 0.5, %v891_v29 }
 0x197   : > { %v955_v31 = vsub.f32 %v923_v30, %v716_v46 }
 0x199   : > { %1053 = vmatmul.f32.gmra.mxu3 %v955_v31 }
 0x19a   : > { %v606_v32 = vpop.f32.mrf.mxu0  ;;  %v719_v49 = vpop.f32.mrf.mxu1 }
 0x19b   : > { %v892_v33 = vmul.f32 %v606_v32, %v606_v32 }
 0x19d   : > { %v924_v34 = vmul.f32 0.5, %v892_v33 }
 0x19f   : > { %v956_v50 = vsub.f32 %v924_v34, %v719_v49 }
 0x1a1   : > { %1056 = vmatmul.f32.gmra.mxu3 %v956_v50 }
 0x1a2   : > { %v609_v15 = vpop.f32.mrf.mxu0  ;;  %v722_v37 = vpop.f32.mrf.mxu1 }
 0x1a3   : > { %v893_v23 = vmul.f32 %v609_v15, %v609_v15 }
 0x1a4   : > { %v1009_v27 = vpop.f32.mrf.mxu3 }
 0x1a5   : > { %v925_v41 = vmul.f32 0.5, %v893_v23  ;;  %v1010_v43 = vadd.f32 %v1009_v27, %v1903_v25 }
 0x1a7   : > { %v957_v45 = vsub.f32 %v925_v41, %v722_v37  ;;  %v1105_v47 = vadd.f32 %v1956_v38, %v1010_v43  ;;  %v2006_v37 = vpop.f32.mrf.mxu2 }
 0x1a9   : > { %v1140_v48 = vand.u32 2147483647, %v1105_v47  ;;  %1059 = vmatmul.f32.gmra.mxu3 %v957_v45 }
 0x1aa   : > { %v612_v17 = vpop.f32.mrf.mxu0  ;;  %v725_v28 = vpop.f32.mrf.mxu1 }
 0x1ab   : > { %v1172_v25 = vsel %vm1137_vm2, %v1140_v48, %v1105_v47  ;;  %v894_v58 = vmul.f32 %v612_v17, %v612_v17 }
 0x1ac   : > { %1205 = vst.msk [vmem:[%s1970_s13 + $0x10] sm:$0xff] %vm1202_vm3, %v1172_v25  ;;  %v1012_v53 = vpop.f32.mrf.mxu3 }
 0x1ad   : > { %v926_v54 = vmul.f32 0.5, %v894_v58  ;;  %v1013_v56 = vadd.f32 %v1012_v53, %v1910_v21 }
 0x1af   : > { %v958_v52 = vsub.f32 %v926_v54, %v725_v28  ;;  %v1106_v59 = vadd.f32 %v1956_v38, %v1013_v56  ;;  %v2015_v53 = vpop.f32.mrf.mxu2 }
 0x1b1   : > { %v1141_v44 = vand.u32 2147483647, %v1106_v59  ;;  %1062 = vmatmul.f32.gmra.mxu3 %v958_v52 }
 0x1b2   : > { %v615_v60 = vpop.f32.mrf.mxu0  ;;  %v728_v61 = vpop.f32.mrf.mxu1 }
 0x1b3   : > { %v1173_v62 = vsel %vm1137_vm2, %v1141_v44, %v1106_v59  ;;  %v895_v0 = vmul.f32 %v615_v60, %v615_v60 }
 0x1b4   : > { %1206 = vst.msk [vmem:[%s1970_s13 + $0x18] sm:$0xff] %vm1202_vm3, %v1173_v62  ;;  %v1015_v22 = vpop.f32.mrf.mxu3 }
 0x1b5   : > { %v927_v14 = vmul.f32 0.5, %v895_v0  ;;  %v1016_v21 = vadd.f32 %v1015_v22, %v1920_v40 }
 0x1b7   : > { %v959_v36 = vsub.f32 %v927_v14, %v728_v61  ;;  %v1107_v3 = vadd.f32 %v1956_v38, %v1016_v21  ;;  %v2024_v14 = vpop.f32.mrf.mxu2 }
 0x1b9   : > { %v1142_v8 = vand.u32 2147483647, %v1107_v3  ;;  %1065 = vmatmul.f32.gmra.mxu3 %v959_v36 }
 0x1ba   : > { %v618_v39 = vpop.f32.mrf.mxu0  ;;  %v731_v10 = vpop.f32.mrf.mxu1 }
 0x1bb   : > { %v1174_v12 = vsel %vm1137_vm2, %v1142_v8, %v1107_v3  ;;  %v896_v42 = vmul.f32 %v618_v39, %v618_v39 }
 0x1bc   : > { %1207 = vst.msk [vmem:[%s1970_s13 + $0x20] sm:$0xff] %vm1202_vm3, %v1174_v12  ;;  %v1018_v18 = vpop.f32.mrf.mxu3 }
 0x1bd   : > { %v928_v55 = vmul.f32 0.5, %v896_v42  ;;  %v1019_v40 = vadd.f32 %v1018_v18, %v1927_v51 }
 0x1bf   : > { %v960_v19 = vsub.f32 %v928_v55, %v731_v10  ;;  %v1108_v20 = vadd.f32 %v1956_v38, %v1019_v40 }
 0x1c1   : > { %v1143_v11 = vand.u32 2147483647, %v1108_v20  ;;  %1068 = vmatmul.f32.gmra.mxu3 %v960_v19 }
 0x1c2   : > { %v621_v24 = vpop.f32.mrf.mxu0  ;;  %v734_v13 = vpop.f32.mrf.mxu1 }
 0x1c3   : > { %v1175_v9 = vsel %vm1137_vm2, %v1143_v11, %v1108_v20  ;;  %v897_v46 = vmul.f32 %v621_v24, %v621_v24  ;;  %v823_v24 = vpop.f32.mrf.mxu2 }
 0x1c4   : > { %1208 = vst.msk [vmem:[%s1970_s13 + $0x28] sm:$0xff] %vm1202_vm3, %v1175_v9  ;;  %v1021_v29 = vpop.f32.mrf.mxu3 }
 0x1c5   : > { %v929_v30 = vmul.f32 0.5, %v897_v46  ;;  %v1022_v51 = vadd.f32 %v1021_v29, %v1938_v1 }
 0x1c7   : > { %v961_v31 = vsub.f32 %v929_v30, %v734_v13  ;;  %v1109_v32 = vadd.f32 %v1956_v38, %v1022_v51 }
 0x1c9   : > { %v1144_v49 = vand.u32 2147483647, %v1109_v32  ;;  %1071 = vmatmul.f32.gmra.mxu3 %v961_v31 }
 0x1ca   : > { %v624_v33 = vpop.f32.mrf.mxu0  ;;  %v737_v34 = vpop.f32.mrf.mxu1 }
 0x1cb   : > { %v1176_v50 = vsel %vm1137_vm2, %v1144_v49, %v1109_v32  ;;  %v898_v35 = vmul.f32 %v624_v33, %v624_v33 }
 0x1cc   : > { %1209 = vst.msk [vmem:[%s1970_s13 + $0x30] sm:$0xff] %vm1202_vm3, %v1176_v50  ;;  %v1024_v15 = vpop.f32.mrf.mxu3 }
 0x1cd   : > { %v930_v23 = vmul.f32 0.5, %v898_v35  ;;  %v1025_v1 = vadd.f32 %v1024_v15, %v1948_v4  ;;  %v826_v35 = vpop.f32.mrf.mxu2 }
 0x1cf   : > { %v962_v27 = vsub.f32 %v930_v23, %v737_v34  ;;  %v1110_v41 = vadd.f32 %v1956_v38, %v1025_v1 }
 0x1d1   : > { %v1145_v43 = vand.u32 2147483647, %v1110_v41  ;;  %1074 = vmatmul.f32.gmra.mxu3 %v962_v27 }
 0x1d2   : > { %v627_v45 = vpop.f32.mrf.mxu0  ;;  %v740_v47 = vpop.f32.mrf.mxu1 }
 0x1d3   : > { %v1177_v48 = vsel %vm1137_vm2, %v1145_v43, %v1110_v41  ;;  %v899_v17 = vmul.f32 %v627_v45, %v627_v45 }
 0x1d4   : > { %1210 = vst.msk [vmem:[%s1970_s13 + $0x38] sm:$0xff] %vm1202_vm3, %v1177_v48  ;;  %v1027_v28 = vpop.f32.mrf.mxu3 }
 0x1d5   : > { %v931_v25 = vmul.f32 0.5, %v899_v17  ;;  %v1028_v58 = vadd.f32 %v1027_v28, %v1960_v2  ;;  %v829_v28 = vpop.f32.mrf.mxu2 }
 0x1d7   : > { %v963_v4 = vsub.f32 %v931_v25, %v740_v47  ;;  %v1111_v54 = vadd.f32 %v1956_v38, %v1028_v58  ;;  %v905_v25 = vmul.f32 %v1837_v6, %v1837_v6 }
 0x1d9   : > { %v1146_v56 = vand.u32 2147483647, %v1111_v54  ;;  %1077 = vmatmul.f32.gmra.mxu3 %v963_v4 }
 0x1da   : > { %v630_v52 = vpop.f32.mrf.mxu0  ;;  %v743_v59 = vpop.f32.mrf.mxu1 }
 0x1db   : > { %v1178_v44 = vsel %vm1137_vm2, %v1146_v56, %v1111_v54  ;;  %v900_v60 = vmul.f32 %v630_v52, %v630_v52 }
 0x1dc   : > { %1211 = vst.msk [vmem:[%s1970_s13 + $0x40] sm:$0xff] %vm1202_vm3, %v1178_v44  ;;  %v1030_v61 = vpop.f32.mrf.mxu3 }
 0x1dd   : > { %v932_v62 = vmul.f32 0.5, %v900_v60  ;;  %v1031_v2 = vadd.f32 %v1030_v61, %v1977_v57 }
 0x1df   : > { %v964_v0 = vsub.f32 %v932_v62, %v743_v59  ;;  %v1112_v22 = vadd.f32 %v1956_v38, %v1031_v2  ;;  %v937_v59 = vmul.f32 0.5, %v905_v25 }
 0x1e1   : > { %v1147_v21 = vand.u32 2147483647, %v1112_v22  ;;  %1080 = vmatmul.f32.gmra.mxu3 %v964_v0 }
 0x1e2   : > { %v633_v36 = vpop.f32.mrf.mxu0  ;;  %v746_v3 = vpop.f32.mrf.mxu1 }
 0x1e3   : > { %v1179_v8 = vsel %vm1137_vm2, %v1147_v21, %v1112_v22  ;;  %v901_v39 = vmul.f32 %v633_v36, %v633_v36 }
 0x1e4   : > { %1212 = vst.msk [vmem:[%s1970_s13 + $0x48] sm:$0xff] %vm1202_vm3, %v1179_v8  ;;  %v1033_v10 = vpop.f32.mrf.mxu3 }
 0x1e5   : > { %v933_v12 = vmul.f32 0.5, %v901_v39  ;;  %v1034_v57 = vadd.f32 %v1033_v10, %v1986_v7 }
 0x1e7   : > { %v965_v42 = vsub.f32 %v933_v12, %v746_v3  ;;  %v1113_v18 = vadd.f32 %v1956_v38, %v1034_v57 }
 0x1e9   : > { %v1148_v55 = vand.u32 2147483647, %v1113_v18  ;;  %1083 = vmatmul.f32.gmra.mxu3 %v965_v42 }
 0x1ea   : > { %v636_v40 = vpop.f32.mrf.mxu0  ;;  %v749_v19 = vpop.f32.mrf.mxu1 }
 0x1eb   : > { %v1180_v20 = vsel %vm1137_vm2, %v1148_v55, %v1113_v18  ;;  %v902_v11 = vmul.f32 %v636_v40, %v636_v40 }
 0x1ec   : > { %1213 = vst.msk [vmem:[%s1970_s13 + $0x50] sm:$0xff] %vm1202_vm3, %v1180_v20  ;;  %v1036_v13 = vpop.f32.mrf.mxu3 }
 0x1ed   : > { %v934_v9 = vmul.f32 0.5, %v902_v11  ;;  %v1037_v46 = vadd.f32 %v1036_v13, %v1994_v26 }
 0x1ef   : > { %v966_v7 = vsub.f32 %v934_v9, %v749_v19  ;;  %v1114_v29 = vadd.f32 %v1956_v38, %v1037_v46 }
 0x1f1   : > { %v1149_v30 = vand.u32 2147483647, %v1114_v29  ;;  %1086 = vmatmul.f32.gmra.mxu3 %v966_v7 }
 0x1f2   : > { %v639_v51 = vpop.f32.mrf.mxu0  ;;  %v752_v31 = vpop.f32.mrf.mxu1 }
 0x1f3   : > { %v1181_v32 = vsel %vm1137_vm2, %v1149_v30, %v1114_v29  ;;  %v903_v49 = vmul.f32 %v639_v51, %v639_v51 }
 0x1f4   : > { %1214 = vst.msk [vmem:[%s1970_s13 + $0x58] sm:$0xff] %vm1202_vm3, %v1181_v32  ;;  %v1039_v33 = vpop.f32.mrf.mxu3 }
 0x1f5   : > { %v935_v34 = vmul.f32 0.5, %v903_v49  ;;  %v1040_v50 = vadd.f32 %v1039_v33, %v2006_v37 }
 0x1f7   : > { %v967_v26 = vsub.f32 %v935_v34, %v752_v31  ;;  %v1115_v15 = vadd.f32 %v1956_v38, %v1040_v50 }
 0x1f9   : > { %v1150_v23 = vand.u32 2147483647, %v1115_v15  ;;  %1089 = vmatmul.f32.gmra.mxu3 %v967_v26 }
 0x1fa   : > { %v642_v1 = vpop.f32.mrf.mxu0  ;;  %v755_v27 = vpop.f32.mrf.mxu1 }
 0x1fb   : > { %v1182_v41 = vsel %vm1137_vm2, %v1150_v23, %v1115_v15  ;;  %v904_v43 = vmul.f32 %v642_v1, %v642_v1 }
 0x1fc   : > { %1215 = vst.msk [vmem:[%s1970_s13 + $0x60] sm:$0xff] %vm1202_vm3, %v1182_v41  ;;  %v1042_v45 = vpop.f32.mrf.mxu3 }
 0x1fd   : > { %v936_v47 = vmul.f32 0.5, %v904_v43  ;;  %v1043_v48 = vadd.f32 %v1042_v45, %v2015_v53 }
 0x1ff   : > { %v968_v37 = vsub.f32 %v936_v47, %v755_v27  ;;  %v1116_v17 = vadd.f32 %v1956_v38, %v1043_v48 }
 0x201   : > { %v1151_v58 = vand.u32 2147483647, %v1116_v17  ;;  %1092 = vmatmul.f32.gmra.mxu3 %v968_v37 }
 0x202   : > { %v1003_v4 = vpop.f32.mrf.mxu0  ;;  %v758_v52 = vpop.f32.mrf.mxu1 }
 0x203   : > { %v1183_v54 = vsel %vm1137_vm2, %v1151_v58, %v1116_v17  ;;  %v1004_v56 = vadd.f32 %v1003_v4, %v1887_v63  ;;  %v969_v6 = vsub.f32 %v937_v59, %v758_v52  ;;  %v832_v63 = vpop.f32.mrf.mxu2 }
 0x204   : > { %1216 = vst.msk [vmem:[%s1970_s13 + $0x68] sm:$0xff] %vm1202_vm3, %v1183_v54  ;;  %v1045_v53 = vpop.f32.mrf.mxu3 }
 0x205   : > { %v1103_v44 = vadd.f32 %v1956_v38, %v1004_v56  ;;  %v1046_v60 = vadd.f32 %v1045_v53, %v2024_v14 }
 0x207   : > { %v1138_v61 = vand.u32 2147483647, %v1103_v44  ;;  %v1117_v62 = vadd.f32 %v1956_v38, %v1046_v60 }
 0x209   : > { %v1170_v2 = vsel %vm1137_vm2, %v1138_v61, %v1103_v44  ;;  %v1152_v0 = vand.u32 2147483647, %v1117_v62  ;;  %1095 = vmatmul.f32.gmra.mxu3 %v969_v6 }
 0x20a   : > { %1203 = vst.msk [vmem:[%s1970_s13] sm:$0xff] %vm1202_vm3, %v1170_v2  ;;  %v1006_v22 = vpop.f32.mrf.mxu0 }
 0x20b   : > { %v1184_v21 = vsel %vm1137_vm2, %v1152_v0, %v1117_v62  ;;  %v1007_v14 = vadd.f32 %v1006_v22, %v1894_v5  ;;  %v835_v42 = vpop.f32.mrf.mxu2 }
 0x20c   : > { %1217 = vst.msk [vmem:[%s1970_s13 + $0x70] sm:$0xff] %vm1202_vm3, %v1184_v21  ;;  %v1048_v36 = vpop.f32.mrf.mxu3 }
 0x20d   : > { %v1104_v3 = vadd.f32 %v1956_v38, %v1007_v14  ;;  %v1049_v8 = vadd.f32 %v1048_v36, %v823_v24 }
 0x20f   : > { %v1139_v39 = vand.u32 2147483647, %v1104_v3  ;;  %v1118_v10 = vadd.f32 %v1956_v38, %v1049_v8 }
 0x211   : > { %v1171_v12 = vsel %vm1137_vm2, %v1139_v39, %v1104_v3  ;;  %v1153_v57 = vand.u32 2147483647, %v1118_v10 }
 0x212   : > { %1204 = vst.msk [vmem:[%s1970_s13 + $0x8] sm:$0xff] %vm1202_vm3, %v1171_v12 }
 0x213   : > { %v1185_v5 = vsel %vm1137_vm2, %v1153_v57, %v1118_v10  ;;  %v838_v13 = vpop.f32.mrf.mxu2 }
 0x214   : > { %1218 = vst.msk [vmem:[%s1970_s13 + $0x78] sm:$0xff] %vm1202_vm3, %v1185_v5  ;;  %v1051_v18 = vpop.f32.mrf.mxu3 }
 0x215   : > { %v1052_v55 = vadd.f32 %v1051_v18, %v826_v35 }
 0x217   : > { %v1119_v40 = vadd.f32 %v1956_v38, %v1052_v55 }
 0x219   : > { %v1154_v19 = vand.u32 2147483647, %v1119_v40 }
 0x21b   : > { %v1186_v20 = vsel %vm1137_vm2, %v1154_v19, %v1119_v40  ;;  %v841_v31 = vpop.f32.mrf.mxu2 }
 0x21c   : > { %1219 = vst.msk [vmem:[%s1970_s13 + $0x80] sm:$0xff] %vm1202_vm3, %v1186_v20  ;;  %v1054_v11 = vpop.f32.mrf.mxu3 }
 0x21d   : > { %v1055_v24 = vadd.f32 %v1054_v11, %v829_v28 }
 0x21f   : > { %v1120_v9 = vadd.f32 %v1956_v38, %v1055_v24 }
 0x221   : > { %v1155_v46 = vand.u32 2147483647, %v1120_v9 }
 0x223   : > { %v1187_v7 = vsel %vm1137_vm2, %v1155_v46, %v1120_v9  ;;  %v844_v26 = vpop.f32.mrf.mxu2 }
 0x224   : > { %1220 = vst.msk [vmem:[%s1970_s13 + $0x88] sm:$0xff] %vm1202_vm3, %v1187_v7  ;;  %v1057_v29 = vpop.f32.mrf.mxu3 }
 0x225   : > { %v1058_v30 = vadd.f32 %v1057_v29, %v832_v63 }
 0x227   : > { %v1121_v51 = vadd.f32 %v1956_v38, %v1058_v30 }
 0x229   : > { %v1156_v32 = vand.u32 2147483647, %v1121_v51 }
 0x22b   : > { %v1188_v49 = vsel %vm1137_vm2, %v1156_v32, %v1121_v51  ;;  %v847_v45 = vpop.f32.mrf.mxu2 }
 0x22c   : > { %1221 = vst.msk [vmem:[%s1970_s13 + $0x90] sm:$0xff] %vm1202_vm3, %v1188_v49  ;;  %v1060_v33 = vpop.f32.mrf.mxu3 }
 0x22d   : > { %v1061_v34 = vadd.f32 %v1060_v33, %v835_v42 }
 0x22f   : > { %v1122_v50 = vadd.f32 %v1956_v38, %v1061_v34 }
 0x231   : > { %v1157_v35 = vand.u32 2147483647, %v1122_v50 }
 0x233   : > { %v1189_v15 = vsel %vm1137_vm2, %v1157_v35, %v1122_v50  ;;  %v850_v4 = vpop.f32.mrf.mxu2 }
 0x234   : > { %1222 = vst.msk [vmem:[%s1970_s13 + $0x98] sm:$0xff] %vm1202_vm3, %v1189_v15  ;;  %v1063_v23 = vpop.f32.mrf.mxu3 }
 0x235   : > { %v1064_v1 = vadd.f32 %v1063_v23, %v838_v13 }
 0x237   : > { %v1123_v27 = vadd.f32 %v1956_v38, %v1064_v1 }
 0x239   : > { %v1158_v41 = vand.u32 2147483647, %v1123_v27 }
 0x23b   : > { %v1190_v43 = vsel %vm1137_vm2, %v1158_v41, %v1123_v27  ;;  %v853_v60 = vpop.f32.mrf.mxu2 }
 0x23c   : > { %1223 = vst.msk [vmem:[%s1970_s13 + $0xa0] sm:$0xff] %vm1202_vm3, %v1190_v43  ;;  %v1066_v47 = vpop.f32.mrf.mxu3 }
 0x23d   : > { %v1067_v48 = vadd.f32 %v1066_v47, %v841_v31 }
 0x23f   : > { %v1124_v37 = vadd.f32 %v1956_v38, %v1067_v48 }
 0x241   : > { %v1159_v17 = vand.u32 2147483647, %v1124_v37 }
 0x243   : > { %v1191_v28 = vsel %vm1137_vm2, %v1159_v17, %v1124_v37  ;;  %v856_v22 = vpop.f32.mrf.mxu2 }
 0x244   : > { %1224 = vst.msk [vmem:[%s1970_s13 + $0xa8] sm:$0xff] %vm1202_vm3, %v1191_v28  ;;  %v1069_v25 = vpop.f32.mrf.mxu3 }
 0x245   : > { %v1070_v58 = vadd.f32 %v1069_v25, %v844_v26 }
 0x247   : > { %v1125_v54 = vadd.f32 %v1956_v38, %v1070_v58 }
 0x249   : > { %v1160_v56 = vand.u32 2147483647, %v1125_v54 }
 0x24b   : > { %v1192_v52 = vsel %vm1137_vm2, %v1160_v56, %v1125_v54  ;;  %v859_v10 = vpop.f32.mrf.mxu2 }
 0x24c   : > { %1225 = vst.msk [vmem:[%s1970_s13 + $0xb0] sm:$0xff] %vm1202_vm3, %v1192_v52  ;;  %v1072_v53 = vpop.f32.mrf.mxu3 }
 0x24d   : > { %v1073_v59 = vadd.f32 %v1072_v53, %v847_v45 }
 0x24f   : > { %v1126_v44 = vadd.f32 %v1956_v38, %v1073_v59 }
 0x251   : > { %v1161_v6 = vand.u32 2147483647, %v1126_v44 }
 0x253   : > { %v1193_v61 = vsel %vm1137_vm2, %v1161_v6, %v1126_v44  ;;  %v862_v19 = vpop.f32.mrf.mxu2 }
 0x254   : > { %1226 = vst.msk [vmem:[%s1970_s13 + $0xb8] sm:$0xff] %vm1202_vm3, %v1193_v61  ;;  %v1075_v62 = vpop.f32.mrf.mxu3 }
 0x255   : > { %v1076_v2 = vadd.f32 %v1075_v62, %v850_v4 }
 0x257   : > { %v1127_v0 = vadd.f32 %v1956_v38, %v1076_v2 }
 0x259   : > { %v1162_v63 = vand.u32 2147483647, %v1127_v0 }
 0x25b   : > { %v1194_v21 = vsel %vm1137_vm2, %v1162_v63, %v1127_v0  ;;  %v865_v7 = vpop.f32.mrf.mxu2 }
 0x25c   : > { %1227 = vst.msk [vmem:[%s1970_s13 + $0xc0] sm:$0xff] %vm1202_vm3, %v1194_v21  ;;  %v1078_v14 = vpop.f32.mrf.mxu3 }
 0x25d   : > { %v1079_v36 = vadd.f32 %v1078_v14, %v853_v60 }
 0x25f   : > { %v1128_v3 = vadd.f32 %v1956_v38, %v1079_v36 }
 0x261   : > { %v1163_v8 = vand.u32 2147483647, %v1128_v3 }
 0x263   : > { %v1195_v39 = vsel %vm1137_vm2, %v1163_v8, %v1128_v3  ;;  %v868_v33 = vpop.f32.mrf.mxu2 }
 0x264   : > { %1228 = vst.msk [vmem:[%s1970_s13 + $0xc8] sm:$0xff] %vm1202_vm3, %v1195_v39  ;;  %v1081_v12 = vpop.f32.mrf.mxu3 }
 0x265   : > { %v1082_v57 = vadd.f32 %v1081_v12, %v856_v22 }
 0x267   : > { %v1129_v5 = vadd.f32 %v1956_v38, %v1082_v57 }
 0x269   : > { %v1164_v42 = vand.u32 2147483647, %v1129_v5 }
 0x26b   : > { %v1196_v18 = vsel %vm1137_vm2, %v1164_v42, %v1129_v5  ;;  %v871_v1 = vpop.f32.mrf.mxu2 }
 0x26c   : > { %1229 = vst.msk [vmem:[%s1970_s13 + $0xd0] sm:$0xff] %vm1202_vm3, %v1196_v18  ;;  %v1084_v55 = vpop.f32.mrf.mxu3 }
 0x26d   : > { %v1085_v40 = vadd.f32 %v1084_v55, %v859_v10 }
 0x26f   : > { %v1130_v20 = vadd.f32 %v1956_v38, %v1085_v40 }
 0x271   : > { %v1165_v11 = vand.u32 2147483647, %v1130_v20 }
 0x273   : > { %v1197_v24 = vsel %vm1137_vm2, %v1165_v11, %v1130_v20 }
 0x274   : > { %1230 = vst.msk [vmem:[%s1970_s13 + $0xd8] sm:$0xff] %vm1202_vm3, %v1197_v24  ;;  %v1087_v13 = vpop.f32.mrf.mxu3 }
 0x275   : > { %v1088_v9 = vadd.f32 %v1087_v13, %v862_v19 }
 0x277   : > { %v1131_v46 = vadd.f32 %v1956_v38, %v1088_v9 }
 0x279   : > { %v1166_v29 = vand.u32 2147483647, %v1131_v46 }
 0x27b   : > { %v1198_v30 = vsel %vm1137_vm2, %v1166_v29, %v1131_v46 }
 0x27c   : > { %1231 = vst.msk [vmem:[%s1970_s13 + $0xe0] sm:$0xff] %vm1202_vm3, %v1198_v30  ;;  %v1090_v51 = vpop.f32.mrf.mxu3 }
 0x27d   : > { %v1091_v31 = vadd.f32 %v1090_v51, %v865_v7 }
 0x27f   : > { %v1132_v32 = vadd.f32 %v1956_v38, %v1091_v31 }
 0x281   : > { %v1167_v49 = vand.u32 2147483647, %v1132_v32 }
 0x283   : > { %v1199_v34 = vsel %vm1137_vm2, %v1167_v49, %v1132_v32 }
 0x284   : > { %1232 = vst.msk [vmem:[%s1970_s13 + $0xe8] sm:$0xff] %vm1202_vm3, %v1199_v34  ;;  %v1093_v50 = vpop.f32.mrf.mxu3 }
 0x285   : > { %v1094_v35 = vadd.f32 %v1093_v50, %v868_v33 }
 0x287   : > { %v1133_v26 = vadd.f32 %v1956_v38, %v1094_v35 }
 0x289   : > { %v1168_v15 = vand.u32 2147483647, %v1133_v26 }
 0x28b   : > { %v1200_v23 = vsel %vm1137_vm2, %v1168_v15, %v1133_v26 }
 0x28c   : > { %1233 = vst.msk [vmem:[%s1970_s13 + $0xf0] sm:$0xff] %vm1202_vm3, %v1200_v23  ;;  %v1096_v27 = vpop.f32.mrf.mxu3 }
 0x28d   : > { %v1097_v41 = vadd.f32 %v1096_v27, %v871_v1 }
 0x28f   : > { %v1134_v43 = vadd.f32 %v1956_v38, %v1097_v41 }
 0x291   : > { %v1169_v45 = vand.u32 2147483647, %v1134_v43 }
 0x293   : > { %v1201_v47 = vsel %vm1137_vm2, %v1169_v45, %v1134_v43 }
 0x294   : > { %1234 = vst.msk [vmem:[%s1970_s13 + $0xf8] sm:$0xff] %vm1202_vm3, %v1201_v47 }
 0x295 PF: > { %s14_s15 = sadd.s32 1, %s1434_s15  }
 0x296   : > { %p11_p4 = scmp.ge.s32.totalorder %s14_s15, 6  }
 0x298   :  { %13 = sbr.rel (!%p11_p4) target bundleno = 1 (0x1), region = 66 }

</bundles_post_ra>
